<compile_context>
chip_gen: v6e
topology: v6e:2x2x1
jax: 0.10.0
libtpu: 0.0.40
codegen_flags: <defaults>
</compile_context>

<pallas_src>
from functools import partial

import jax
import jax.numpy as jnp
from jax import lax
from jax.experimental import pallas as pl
from jax.experimental.pallas import tpu as pltpu

# TODO(synk): Vocab.special2index('<sep>') comes from the dataset vocab; use a
# fixed demo index here.
SEP_I = 3


def _token_segment_embedding_kernel(
    len_ref,      # SMEM (B,) int32      scalar-prefetched sequence lengths
    tok_col_ref,  # VMEM (1, S, 1) int32 token ids along sublanes
    tok_row_ref,  # VMEM (1, 1, S) int32 token ids along lanes
    tok_emb_ref,  # VMEM (V, D) f32      token embedding table
    seg_emb_ref,  # VMEM (G, D) f32      segment embedding table
    out_ref,      # VMEM (1, S, D) f32
    *,
    sep_i: int,
):
    b = pl.program_id(0)
    s = tok_col_ref.shape[1]
    v, _ = tok_emb_ref.shape
    g = seg_emb_ref.shape[0]

    length = len_ref[b]

    # --- valid-position masks in both layouts --------------------------------
    toks_c = tok_col_ref[0]                                     # (S, 1)
    pos_c = lax.broadcasted_iota(jnp.int32, (s, 1), 0)
    valid_c = pos_c < length                                    # (S, 1) bool
    toks_c = jnp.where(valid_c, toks_c, 0)                      # neutralize -1 pads

    toks_r = tok_row_ref[0]                                     # (1, S)
    pos_r = lax.broadcasted_iota(jnp.int32, (1, s), 1)
    valid_r = pos_r < length                                    # (1, S) bool

    # --- segment ids: inclusive cumsum of (tok == <sep>) ---------------------
    is_sep_r = jnp.where(jnp.logical_and(toks_r == sep_i, valid_r), 1.0, 0.0)  # (1, S)
    row = lax.broadcasted_iota(jnp.int32, (s, s), 0)            # output position t
    col = lax.broadcasted_iota(jnp.int32, (s, s), 1)            # summed position i
    tri = jnp.where(col <= row, 1.0, 0.0)                       # (S, S) lower-tri ones
    seg_f = jnp.sum(tri * is_sep_r, axis=1, keepdims=True)      # (S, 1) f32
    seg_ids = seg_f.astype(jnp.int32)                           # exact small ints

    # --- embedding lookups as one-hot matmuls on the MXU ---------------------
    tok_oh = jnp.where(
        toks_c == lax.broadcasted_iota(jnp.int32, (s, v), 1), 1.0, 0.0)   # (S, V)
    seg_oh = jnp.where(
        seg_ids == lax.broadcasted_iota(jnp.int32, (s, g), 1), 1.0, 0.0)  # (S, G)

    emb = jnp.dot(tok_oh, tok_emb_ref[...], preferred_element_type=jnp.float32)
    emb = emb + jnp.dot(seg_oh, seg_emb_ref[...], preferred_element_type=jnp.float32)
    emb = jnp.where(valid_c, emb, 0.0)                          # zero padded rows
    out_ref[0] = emb.astype(out_ref.dtype)


def token_segment_embedding(tokens, lengths, tok_table, seg_table, sep_i=SEP_I):
    """TokenSegmentEmbedding forward on a padded batch.

    tokens:  (B, S) int32, padded with -1 past each sequence's length.
    lengths: (B,)   int32.
    tok_table: (V, D) f32, seg_table: (G, D) f32.
    Returns (B, S, D) f32 with rows >= length zeroed.
    """
    B, S = tokens.shape
    V, D = tok_table.shape
    G, D2 = seg_table.shape
    assert D == D2

    # Pad the sequence dim and the table row counts up to multiples of 8 so
    # every block stays sublane-aligned (no whole-array fallback block).
    s_pad = ((S + 7) // 8) * 8
    v_pad = ((V + 7) // 8) * 8
    g_pad = ((G + 7) // 8) * 8

    toks = tokens.astype(jnp.int32)
    if s_pad != S:
        toks = jnp.pad(toks, ((0, 0), (0, s_pad - S)), constant_values=-1)
    tok_tab = jnp.pad(tok_table, ((0, v_pad - V), (0, 0))) if v_pad != V else tok_table
    seg_tab = jnp.pad(seg_table, ((0, g_pad - G), (0, 0))) if g_pad != G else seg_table

    # Same ids in two layouts (pure metadata reshapes on the host):
    tok_col = toks.reshape(B, s_pad, 1)   # ids along sublanes
    tok_row = toks.reshape(B, 1, s_pad)   # ids along lanes

    out = pl.pallas_call(
        partial(_token_segment_embedding_kernel, sep_i=int(sep_i)),
        out_shape=jax.ShapeDtypeStruct((B, s_pad, D), tok_table.dtype),
        grid_spec=pltpu.PrefetchScalarGridSpec(
            num_scalar_prefetch=1,        # lengths -> SMEM, readable per step
            grid=(B,),
            in_specs=[
                pl.BlockSpec((1, s_pad, 1), lambda b, lens: (b, 0, 0)),
                pl.BlockSpec((1, 1, s_pad), lambda b, lens: (b, 0, 0)),
                pl.BlockSpec((v_pad, D), lambda b, lens: (0, 0)),
                pl.BlockSpec((g_pad, D), lambda b, lens: (0, 0)),
            ],
            out_specs=pl.BlockSpec((1, s_pad, D), lambda b, lens: (b, 0, 0)),
        ),
        compiler_params=pltpu.CompilerParams(
            dimension_semantics=("parallel",),   # batch shards across TCs (v7x)
        ),
    )(lengths.astype(jnp.int32), tok_col, tok_row, tok_tab, seg_tab)

    return out[:, :S, :]


if __name__ == "__main__":
    key = jax.random.PRNGKey(0)
    k_tok, k_seg, k_ids = jax.random.split(key, 3)

    # Small, module-consistent shapes: batch=2, max seq len=12, dim=128,
    # num_toks=32, num_segs=4.
    B, S, D, V, G = 2, 12, 128, 32, 4
    lengths = jnp.array([12, 9], dtype=jnp.int32)

    tok_table = 0.02 * jax.random.normal(k_tok, (V, D), jnp.float32)
    seg_table = 0.02 * jax.random.normal(k_seg, (G, D), jnp.float32)

    # Random ids in [4, V) (so <sep>=3 appears only where inserted), plus a few
    # explicit <sep> tokens so several segments are exercised.
    toks = jax.random.randint(k_ids, (B, S), 4, V).astype(jnp.int32)
    toks = toks.at[0, 4].set(SEP_I).at[0, 9].set(SEP_I)
    toks = toks.at[1, 5].set(SEP_I)
    pos = jnp.arange(S)[None, :]
    valid = pos < lengths[:, None]
    toks = jnp.where(valid, toks, -1)     # mimic pad_packed_sequence(..., -1)

    y = token_segment_embedding(toks, lengths, tok_table, seg_table)
    jax.block_until_ready(y)

    # Pure-JAX reference mirroring the PyTorch forward.
    ctoks = jnp.where(valid, toks, 0)
    seg = jnp.cumsum(((ctoks == SEP_I) & valid).astype(jnp.int32), axis=1)
    ref = tok_table[ctoks] + seg_table[seg]
    ref = jnp.where(valid[..., None], ref, 0.0)

    assert y.shape == (B, S, D) and y.dtype == jnp.float32
    assert jnp.allclose(y, ref, atol=1e-5, rtol=1e-5)
    print("KERNEL_OK")
</pallas_src>

<mosaic_0001>
module attributes {stable_mosaic.version = 11 : i64} {
  func.func @_token_segment_embedding_kernel(%arg0: i32, %arg1: memref<2xi32, #tpu.memory_space<smem>>, %arg2: memref<1x16x1xi32, #tpu.memory_space<vmem>>, %arg3: memref<1x1x16xi32, #tpu.memory_space<vmem>>, %arg4: memref<32x128xf32, #tpu.memory_space<vmem>>, %arg5: memref<8x128xf32, #tpu.memory_space<vmem>>, %arg6: memref<1x16x128xf32, #tpu.memory_space<vmem>>) attributes {dimension_semantics = [#tpu.dimension_semantics<parallel>], iteration_bounds = array<i64: 2>, scalar_prefetch = 1 : i64, scratch_operands = 0 : i64, tpu.core_type = #tpu.core_type<tc>, window_params = [{transform_indices = @transform_0, window_bounds = array<i64: 1, 16, 1>}, {transform_indices = @transform_1, window_bounds = array<i64: 1, 1, 16>}, {pipeline_mode = #tpu.pipeline_mode<synchronous>, transform_indices = @transform_2, window_bounds = array<i64: 32, 128>}, {pipeline_mode = #tpu.pipeline_mode<synchronous>, transform_indices = @transform_3, window_bounds = array<i64: 8, 128>}, {transform_indices = @transform_4, window_bounds = array<i64: 1, 16, 128>}]} {
    %0 = arith.index_cast %arg0 : i32 to index
    %1 = memref.load %arg1[%0] : memref<2xi32, #tpu.memory_space<smem>>
    %c0 = arith.constant 0 : index
    %c0_0 = arith.constant 0 : index
    %c0_1 = arith.constant 0 : index
    %2 = vector.load %arg2[%c0, %c0_0, %c0_1] : memref<1x16x1xi32, #tpu.memory_space<vmem>>, vector<1x16x1xi32>
    %3 = vector.shape_cast %2 : vector<1x16x1xi32> to vector<16x1xi32>
    %4 = tpu.iota {dimensions = array<i32: 0>} : vector<16x1xi32>
    %5 = vector.broadcast %1 : i32 to vector<16x1xi32>
    %6 = arith.cmpi slt, %4, %5 : vector<16x1xi32>
    %c0_i32 = arith.constant 0 : i32
    %7 = vector.broadcast %c0_i32 : i32 to vector<16x1xi32>
    %8 = arith.select %6, %3, %7 : vector<16x1xi1>, vector<16x1xi32>
    %c0_2 = arith.constant 0 : index
    %c0_3 = arith.constant 0 : index
    %c0_4 = arith.constant 0 : index
    %9 = vector.load %arg3[%c0_2, %c0_3, %c0_4] : memref<1x1x16xi32, #tpu.memory_space<vmem>>, vector<1x1x16xi32>
    %10 = vector.shape_cast %9 : vector<1x1x16xi32> to vector<1x16xi32>
    %11 = tpu.iota {dimensions = array<i32: 1>} : vector<1x16xi32>
    %12 = vector.broadcast %1 : i32 to vector<1x16xi32>
    %13 = arith.cmpi slt, %11, %12 : vector<1x16xi32>
    %c3_i32 = arith.constant 3 : i32
    %14 = vector.broadcast %c3_i32 : i32 to vector<1x16xi32>
    %15 = arith.cmpi eq, %10, %14 : vector<1x16xi32>
    %16 = arith.andi %15, %13 : vector<1x16xi1>
    %cst = arith.constant 1.000000e+00 : f32
    %cst_5 = arith.constant 0.000000e+00 : f32
    %17 = vector.broadcast %cst : f32 to vector<1x16xf32>
    %18 = vector.broadcast %cst_5 : f32 to vector<1x16xf32>
    %19 = arith.select %16, %17, %18 : vector<1x16xi1>, vector<1x16xf32>
    %20 = tpu.iota {dimensions = array<i32: 0>} : vector<16x16xi32>
    %21 = tpu.iota {dimensions = array<i32: 1>} : vector<16x16xi32>
    %22 = arith.cmpi sle, %21, %20 : vector<16x16xi32>
    %cst_6 = arith.constant 1.000000e+00 : f32
    %cst_7 = arith.constant 0.000000e+00 : f32
    %23 = vector.broadcast %cst_6 : f32 to vector<16x16xf32>
    %24 = vector.broadcast %cst_7 : f32 to vector<16x16xf32>
    %25 = arith.select %22, %23, %24 : vector<16x16xi1>, vector<16x16xf32>
    %26 = vector.broadcast %19 : vector<1x16xf32> to vector<16x16xf32>
    %27 = arith.mulf %25, %26 : vector<16x16xf32>
    %cst_8 = arith.constant dense<0.000000e+00> : vector<16xf32>
    %28 = vector.multi_reduction <add>, %27, %cst_8 [1] : vector<16x16xf32> to vector<16xf32>
    %29 = vector.shape_cast %28 : vector<16xf32> to vector<16x1xf32>
    %30 = arith.fptosi %29 : vector<16x1xf32> to vector<16x1xi32>
    %31 = tpu.iota {dimensions = array<i32: 1>} : vector<16x32xi32>
    %32 = vector.broadcast %8 : vector<16x1xi32> to vector<16x32xi32>
    %33 = arith.cmpi eq, %32, %31 : vector<16x32xi32>
    %cst_9 = arith.constant 1.000000e+00 : f32
    %cst_10 = arith.constant 0.000000e+00 : f32
    %34 = vector.broadcast %cst_9 : f32 to vector<16x32xf32>
    %35 = vector.broadcast %cst_10 : f32 to vector<16x32xf32>
    %36 = arith.select %33, %34, %35 : vector<16x32xi1>, vector<16x32xf32>
    %37 = tpu.iota {dimensions = array<i32: 1>} : vector<16x8xi32>
    %38 = vector.broadcast %30 : vector<16x1xi32> to vector<16x8xi32>
    %39 = arith.cmpi eq, %38, %37 : vector<16x8xi32>
    %cst_11 = arith.constant 1.000000e+00 : f32
    %cst_12 = arith.constant 0.000000e+00 : f32
    %40 = vector.broadcast %cst_11 : f32 to vector<16x8xf32>
    %41 = vector.broadcast %cst_12 : f32 to vector<16x8xf32>
    %42 = arith.select %39, %40, %41 : vector<16x8xi1>, vector<16x8xf32>
    %c0_13 = arith.constant 0 : index
    %c0_14 = arith.constant 0 : index
    %43 = vector.load %arg4[%c0_13, %c0_14] : memref<32x128xf32, #tpu.memory_space<vmem>>, vector<32x128xf32>
    %cst_15 = arith.constant dense<0.000000e+00> : vector<16x128xf32>
    %44 = tpu.matmul %36, %43, %cst_15 {dimension_numbers = #tpu.dot_dimension_numbers<[1], [0], [0], [1], [0, 0, 1, 1], [], []>} : vector<16x32xf32>, vector<32x128xf32>, vector<16x128xf32> -> vector<16x128xf32>
    %c0_16 = arith.constant 0 : index
    %c0_17 = arith.constant 0 : index
    %45 = vector.load %arg5[%c0_16, %c0_17] : memref<8x128xf32, #tpu.memory_space<vmem>>, vector<8x128xf32>
    %cst_18 = arith.constant dense<0.000000e+00> : vector<16x128xf32>
    %46 = tpu.matmul %42, %45, %cst_18 {dimension_numbers = #tpu.dot_dimension_numbers<[1], [0], [0], [1], [0, 0, 1, 1], [], []>} : vector<16x8xf32>, vector<8x128xf32>, vector<16x128xf32> -> vector<16x128xf32>
    %47 = arith.addf %44, %46 : vector<16x128xf32>
    %cst_19 = arith.constant 0.000000e+00 : f32
    %48 = vector.shape_cast %6 : vector<16x1xi1> to vector<16x1xi1>
    %49 = vector.broadcast %48 : vector<16x1xi1> to vector<16x128xi1>
    %50 = vector.broadcast %cst_19 : f32 to vector<16x128xf32>
    %51 = arith.select %49, %47, %50 : vector<16x128xi1>, vector<16x128xf32>
    %c0_20 = arith.constant 0 : index
    %c0_21 = arith.constant 0 : index
    %c0_22 = arith.constant 0 : index
    %52 = vector.load %arg6[%c0_20, %c0_21, %c0_22] : memref<1x16x128xf32, #tpu.memory_space<vmem>>, vector<1x16x128xf32>
    %53 = vector.shape_cast %52 : vector<1x16x128xf32> to vector<16x128xf32>
    %54 = vector.shape_cast %51 : vector<16x128xf32> to vector<1x16x128xf32>
    tpu.vector_store %arg6[%c0_20, %c0_21, %c0_22], %54 {strides = array<i32>} : memref<1x16x128xf32, #tpu.memory_space<vmem>>, vector<1x16x128xf32>,
    return
  }
  func.func @transform_0(%arg0: i32, %arg1: memref<2xi32, #tpu.memory_space<smem>>) -> (i32, i32, i32) {
    %c0_i32 = arith.constant 0 : i32
    %c0_i32_0 = arith.constant 0 : i32
    %c0_i32_1 = arith.constant 0 : i32
    return %arg0, %c0_i32, %c0_i32_0 : i32, i32, i32
  }
  func.func @transform_1(%arg0: i32, %arg1: memref<2xi32, #tpu.memory_space<smem>>) -> (i32, i32, i32) {
    %c0_i32 = arith.constant 0 : i32
    %c0_i32_0 = arith.constant 0 : i32
    %c0_i32_1 = arith.constant 0 : i32
    return %arg0, %c0_i32, %c0_i32_0 : i32, i32, i32
  }
  func.func @transform_2(%arg0: i32, %arg1: memref<2xi32, #tpu.memory_space<smem>>) -> (i32, i32) {
    %c0_i32 = arith.constant 0 : i32
    %c0_i32_0 = arith.constant 0 : i32
    %c0_i32_1 = arith.constant 0 : i32
    return %c0_i32, %c0_i32_0 : i32, i32
  }
  func.func @transform_3(%arg0: i32, %arg1: memref<2xi32, #tpu.memory_space<smem>>) -> (i32, i32) {
    %c0_i32 = arith.constant 0 : i32
    %c0_i32_0 = arith.constant 0 : i32
    %c0_i32_1 = arith.constant 0 : i32
    return %c0_i32, %c0_i32_0 : i32, i32
  }
  func.func @transform_4(%arg0: i32, %arg1: memref<2xi32, #tpu.memory_space<smem>>) -> (i32, i32, i32) {
    %c0_i32 = arith.constant 0 : i32
    %c0_i32_0 = arith.constant 0 : i32
    %c0_i32_1 = arith.constant 0 : i32
    return %arg0, %c0_i32, %c0_i32_0 : i32, i32, i32
  }
}

</mosaic_0001>

<bundles_post_ra>
// kernel: tpu_custom_call.1
= control target key start
LH: loop header
LB: loop body
LE: loop exit
PB: predicated region body
PF: predicated region fallthrough
CT: control target
= control target key end

     0   :  { %s1028_s0 = inlined_call_operand.vmem [shape: s32[2], index: 0, kind: input, shape index: {}]   ;;  %s1029_s1 = inlined_call_operand.vmem [shape: s32[2,16,1], index: 1, kind: input, shape index: {}]   ;;  %s1030_s2 = inlined_call_operand.hbm [shape: s32[2,1,16], index: 2, kind: input, shape index: {}]   ;;  %s1031_s3 = inlined_call_operand.vmem [shape: f32[32,128], index: 3, kind: input, shape index: {}]   ;;  %s1032_s4 = inlined_call_operand.vmem [shape: f32[8,128], index: 4, kind: input, shape index: {}]   ;;  %s1033_s5 = inlined_call_operand.hbm [shape: f32[2,16,128], index: 5, kind: output, shape index: {}]  }
   0x1   :  { %s10_s20 = sshll.u32 %s1028_s0, 4  ;;  %s11_s20 = int_to_ptr.vmem [resolvable:$true] %s10_s20 }
   0x2   :  { %s664_s21 = scalar_lea.vmem %s11_s20, 16  ;;  %p669_p1 = scmp.lt.s32.totalorder %s11_s20, %s11_s20 }
   0x3   :  { %p665_p0 = scmp.ne.s32.totalorder %s11_s20, %s664_s21  ;;  %p670_p2 = scmp.lt.s32.totalorder %s664_s21, %s664_s21 }
   0x5   :  { %p671_p3 = por %p670_p2, %p669_p1 }
   0x7   :  { %p672_p4 = pnand %p671_p3, %p665_p0 }
   0x9   :  { %675 = shalt.err (!%p672_p4)  }
   0xa   :  { %s772_s22 = smov [#allocation3]  }
   0xb   :  { %13 = dma.vmem_to_smem %s11_s20, 16, %s772_s22, [#allocation2] }
   0xc   :  { %746 = dma.done.wait [#allocation2], 16 }
   0xd   :  { %747 = vsyncadd [#allocation2], 4294967280 }
   0xe   :  { %15 = sfence }
   0xf   :  { %16 = vsyncpa [#allocation5], 0 }
  0x10   :  { %18 = vsyncpa [#allocation5 + $0x1], 0 }
  0x11   :  { %19 = vsyncpa [#allocation6], 0 }
  0x12   :  { %21 = vsyncpa [#allocation6 + $0x1], 0  ;;  %s812_s23 = smov 0   ;;  %s814_s0 = smov 0  }
  0x13   :  { %s816_s24 = smov 0   ;;  %s818_s25 = smov 0  }
  0x14 LB: > { %s833_s26 = sadd.s32 4294967295, %s770_s25   ;;  %s563_s27 = sadd.s32 4294967294, %s770_s25   ;;  %s770_s25 = sphi %s818_s25, %s1050_s25   ;;  %s766_s24 = sphi %s816_s24, %s1049_s24   ;;  %s762_s0 = sphi %s814_s0, %s1048_s0   ;;  %s758_s23 = sphi %s812_s23, %s1047_s23  }
  0x15   : > { %s837_s28 = sadd.s32 1, %s770_s25   ;;  %s60_s29 = sadd.s32 1, %s766_s24 }
  0x16   : > { %s57_s30 = ssub.s32 %s770_s25, %s837_s28  ;;  %p67_p5 = scmp.ne.s32.totalorder %s766_s24, %s762_s0 }
  0x17   : > { %p58_p6 = scmp.eq.s32.totalorder %s57_s30, 0  ;;  %p68_p7 = scmp.eq.s32.totalorder %s770_s25, 0 }
  0x18   : > { %p73_p8 = scmp.ne.s32.totalorder %s762_s0, %s758_s23  ;;  %p74_p9 = scmp.eq.s32.totalorder %s833_s26, 0 }
  0x19   : > { %s849_s6 = scalar_select %p58_p6, %s766_s24, %s60_s29  }
  0x1a   : > { %p851_p10 = por %p68_p7, %p67_p5  ;;  %p855_p11 = por %p74_p9, %p73_p8 }
  0x1b   : > { %p139_p12 = scmp.eq.s32.totalorder %s833_s26, 1  ;;  %p145_p13 = scmp.eq.s32.totalorder %s563_s27, 1 }
  0x1c   : > { %s1037_s8 = scalar_select %p855_p11, 1, 0 }
  0x1d   : > { %p623_p1 = scmp.lt.s32.totalorder %s770_s25, 2  ;;  %p862_p2 = por %p139_p12, %p67_p5 }
  0x1e   : > { %p866_p3 = por %p145_p13, %p73_p8  ;;  %s179_s11 = sand.u32 1, %s766_s24  }
  0x1f   : > { %s1038_s9 = scalar_select %p862_p2, 1, 0 }
  0x20   : > { %s1039_s10 = scalar_select %p866_p3, 1, 0 }
  0x21   : > { %s566_s12 = sshll.u32 %s770_s25, 4  ;;  %s182_s16 = scalar_lea.vmem [#allocation4], %s179_s11 }
  0x22   : > { %s875_s15 = scalar_lea.hbm %s1030_s2, %s566_s12  ;;  %s189_s17 = sshll.u32 %s182_s16, 4  ;;  %s877_s17 = int_to_ptr.vmem [resolvable:$true] %s189_s17 }
  0x23   : > { %p881_p4 = pnand %p623_p1, %p851_p10  ;;  %s180_s19 = scalar_lea.sflag [#allocation5], %s179_s11 }
  0x24   : > { %s676_s20 = scalar_lea.hbm %s875_s15, 16  ;;  %s681_s27 = scalar_lea.hbm %s1030_s2, 32 }
  0x25   : > { %p677_p7 = scmp.ne.s32.totalorder %s875_s15, %s676_s20  ;;  %p678_p8 = pneg %p881_p4 }
  0x26   : > { %p682_p10 = scmp.lt.s32.totalorder %s875_s15, %s1030_s2  ;;  %p683_p13 = scmp.lt.s32.totalorder %s681_s27, %s676_s20 }
  0x27   : > { %p679_p9 = pnand %p678_p8, %p677_p7 }
  0x28   : > { %p684_p1 = por %p683_p13, %p682_p10 }
  0x29   : > { %p680_p12 = pneg %p679_p9 }
  0x2b   : > { %p685_p0 = pnand %p684_p1, %p680_p12 }
  0x2d   : > { %688 = shalt.err (!%p685_p0)
}
  0x2e   : > { %s689_s7 = scalar_lea.vmem %s877_s17, 16  ;;  %s773_s11 = smov [#allocation4]  }
  0x2f   : > { %p690_p5 = scmp.ne.s32.totalorder %s877_s17, %s689_s7  ;;  %s694_s12 = sshll.u32 %s773_s11, 4  ;;  %s695_s12 = int_to_ptr.vmem [resolvable:$false] %s694_s12 }
  0x30   : > { %s696_s13 = scalar_lea.vmem %s695_s12, 32  ;;  %p697_p9 = scmp.lt.s32.totalorder %s877_s17, %s695_s12 }
  0x31   : > { %p692_p6 = pnand %p690_p5, %p678_p8  ;;  %p698_p3 = scmp.lt.s32.totalorder %s696_s13, %s689_s7 }
  0x33   : > { %p693_p7 = pneg %p692_p6  ;;  %p699_p2 = por %p698_p3, %p697_p9 }
  0x35   : > { %p700_p11 = pnand %p699_p2, %p693_p7 }
  0x37   : > { %703 = shalt.err (!%p700_p11)
}
  0x38   : > { %618 = dma.hbm_to_vmem [thread:$0]  (!%p881_p4), %s875_s15, 16, %s877_s17, %s180_s19  }
  0x39   : > { %p1041_p0 = scmp.lt.s32.totalorder %s770_s25, 3  ;;  %p1042_p12 = scmp.ge.s32.totalorder %s770_s25, 1 }
  0x3b   : > { %p195_p5 = pnand %p1042_p12, %p1041_p0 }
  0x3c   : > { %s910_s14 = sand.u32 (!%p195_p5), 1, %s762_s0   ;;  %p1043_p11 = scmp.ne.s32.totalorder (!%p195_p5), %s1037_s8, 0 }
  0x3d   : > { %198 = sbr.rel (%p195_p5) target bundleno = 442 (0x1ba), region = 36  ;;  %s201_s16 = scalar_lea.sflag (!%p195_p5), [#allocation5], %s910_s14 }
  0x3e   : > { %s203_s20 = scalar_lea.vmem (!%p195_p5), [#allocation4], %s910_s14 }
  0x42   : > { %749 = dma.done.wait (%p1043_p11), %s201_s16, 16  }
  0x43   : > { %751 = vsyncadd (%p1043_p11), %s201_s16, 4294967280  ;;  %v240_v0 = vlaneseq  ;;  %p232_p2 = scmp.lt.s32.totalorder %s833_s26, 1  ;;  %s237_s15 = sld [smem:[#allocation3 + %s833_s26]]  ;;  %v774_v1 = vmov 0   ;;  %v248_v6 = vld [vmem:[%s203_s20] sm:$0x1] }
  0x44   : > { %662 = vset.pattern.permute.xlu1 %v774_v1  ;;  %663 = vset.pattern.permute.xlu0 %v774_v1  ;;  %vm252_vm3 = vcmp.eq.s32.totalorder %v248_v6, 3  ;;  %v293_v10 = vld [vmem:[%s1031_s3 + $0x18] sm:$0xff]  ;;  %v292_v11 = vld [vmem:[%s1031_s3 + $0x10] sm:$0xff]  ;;  %v775_v13 = vmov 0.0   ;;  %vm267_vm7 = vcmask 130048   ;;  %v291_v23 = vld [vmem:[%s1031_s3 + $0x8] sm:$0xff] }
  0x45   : > { %v920_v2 = vshrl.u32 %v240_v0, 7  ;;  %s233_s17 = scalar_select %p232_p2, %s833_s26, 1  ;;  %v923_v3 = vand.u32 127, %v240_v0  ;;  %596 = vmatprep.subr.mxu1 %v293_v10  ;;  %v290_v24 = vld [vmem:[%s1031_s3] sm:$0xff]  ;;  %vm377_vm8 = vcmask 261120   ;;  %vm295_vm11 = vcmask 64512  }
  0x46   : > { %597 = vmatpush3.msra.mxu1 %v293_v10  ;;  %v294_v25 = vld [vmem:[%s1032_s4] sm:$0xff]  ;;  %s581_s8 = sshll.u32 %s833_s26, 8  ;;  %s468_s26 = scalar_lea.sflag [#allocation6], %s910_s14 }
  0x47   : > { %v926_v4 = vadd.s32 8, %v920_v2  ;;  %s580_s18 = sshll.u32 %s233_s17, 4  ;;  %vm255_vm0 = vcmp.le.s32.totalorder %v923_v3, %v920_v2  ;;  %v262_v7 = vsub.s32 0, %v920_v2  ;;  %598 = vmatprep.subr.mxu1 %v292_v11  ;;  %591 = vmatprep.subr.mxu0 %v294_v25  ;;  %s982_s22 = scalar_lea.hbm %s1033_s5, %s581_s8 }
  0x48   : > { %s236_s21 = scalar_lea.vmem %s1029_s1, %s580_s18  ;;  %v257_v15 = vsel %vm255_vm0, 1.0, %v775_v13  ;;  %599 = vmatpush3.msra.mxu1 %v292_v11  ;;  %592 = vmatpush3.msra.mxu0 %v294_v25  ;;  %p1044_p4 = scmp.ne.s32.totalorder %s1038_s9, 0 }
  0x49   : > { %v931_v5 = vstv %s237_s15  ;;  %vm256_vm1 = vcmp.le.s32.totalorder %v923_v3, %v926_v4  ;;  %v238_v8 = vld [vmem:[%s236_s21] sm:$0xff]  ;;  %v239_v9 = vld [vmem:[%s236_s21 + $0x8] sm:$0xff]  ;;  %600 = vmatprep.subr.mxu1 %v291_v23  ;;  %s568_s15 = sshll.u32 %s910_s14, 4  ;;  %s776_s29 = smov [#allocation7]  }
  0x4a   : > { %vm251_vm2 = vcmp.lt.s32.totalorder %v923_v3, %v931_v5  ;;  %vm244_vm4 = vcmp.lt.s32.totalorder %v920_v2, %v931_v5  ;;  %vm245_vm5 = vcmp.lt.s32.totalorder %v926_v4, %v931_v5  ;;  %v258_v16 = vsel %vm256_vm1, 1.0, %v775_v13  ;;  %601 = vmatpush3.msra.mxu1 %v291_v23  ;;  %s231_s17 = scalar_lea.vmem [#allocation7], %s568_s15  ;;  %s708_s30 = sshll.u32 %s776_s29, 4  ;;  %s709_s30 = int_to_ptr.vmem [resolvable:$false] %s708_s30 }
  0x4b   : > { %vm253_vm6 = vmand %vm252_vm3, %vm251_vm2  ;;  %v246_v12 = vsel %vm244_vm4, %v238_v8, 0  ;;  %v247_v18 = vsel %vm245_vm5, %v239_v9, 0  ;;  %602 = vmatprep.subr.mxu1 %v290_v24  ;;  %s481_s18 = sshll.u32 %s231_s17, 4  ;;  %s710_s7 = scalar_lea.vmem %s709_s30, 512  ;;  %s974_s18 = int_to_ptr.vmem [resolvable:$true] %s481_s18 }
  0x4c   : > { %v254_v14 = vsel %vm253_vm6, 1.0, %v775_v13  ;;  %277 = vperm.xlu1 %662, %v246_v12   ;;  %603 = vmatpush3.msra.mxu1 %v290_v24  ;;  %s704_s27 = scalar_lea.vmem %s974_s18, 256  ;;  %p711_p10 = scmp.lt.s32.totalorder %s974_s18, %s709_s30 }
  0x4d   : > { %v263_v17 = vrot.slane %v254_v14, %v262_v7  ;;  %p705_p3 = scmp.ne.s32.totalorder %s974_s18, %s704_s27  ;;  %p712_p13 = scmp.lt.s32.totalorder %s710_s7, %s704_s27 }
  0x4f   : > { %v265_v19 = vmul.f32 %v263_v17, %v257_v15  ;;  %v266_v20 = vmul.f32 %v263_v17, %v258_v16  ;;  %p706_p6 = pnand %p705_p3, %p1044_p4  ;;  %p713_p1 = por %p712_p13, %p711_p10 }
  0x50   : > { %280 = vperm.xlu1 %662, %v247_v18  }
  0x51   : > { %v268_v21 = vsel %vm267_vm7, %v265_v19, 0.0  ;;  %v271_v22 = vsel %vm267_vm7, %v266_v20, 0.0  ;;  %p707_p8 = pneg %p706_p6 }
  0x52   : > { %269 = vadd.xlane.f32.xlu0 %v268_v21 }
  0x53   : > { %p714_p7 = pnand %p713_p1, %p707_p8 }
  0x56   : > { %272 = vadd.xlane.f32.xlu0 %v271_v22 }
  0xc7   : > { %v278_v26 = vpop.permute.xlu1 %277 }
  0xc8   : > { %vm282_vm9 = vcmp.eq.s32.totalorder %v278_v26, %v923_v3 }
  0xc9   : > { %v284_v27 = vsel %vm282_vm9, 1.0, %v775_v13 }
  0xca   : > { %604 = vmatprep.mubr.msk.f32.mxu1 %vm377_vm8, %v284_v27 }
  0xcb   : > { %v281_v28 = vpop.permute.xlu1 %280 }
  0xcc   : > { %vm283_vm10 = vcmp.eq.s32.totalorder %v281_v28, %v923_v3 }
  0xcd   : > { %v285_v29 = vsel %vm283_vm10, 1.0, %v775_v13 }
  0xce   : > { %605 = vmatmul.mubr.msk.f32.vlgmr.msra.gmra.mxu1 %vm377_vm8, %v285_v29 }
  0xdb   : > { %v270_v30 = vpop.xlane.xlu0 %269 }
  0xdc   : > { %v607_v31 = vtrunc.f32 %v270_v30 }
  0xde   : > { %v608_v32 = vcvt.f32.s32 %v607_v31 }
  0xdf   : > { %v273_v33 = vpop.xlane.xlu0 %272 }
  0xe0   : > { %v609_v34 = vtrunc.f32 %v273_v33  ;;  %vm286_vm12 = vcmp.eq.s32.totalorder %v608_v32, %v923_v3 }
  0xe1   : > { %v288_v35 = vsel %vm286_vm12, 1.0, %v775_v13 }
  0xe2   : > { %v610_v36 = vcvt.f32.s32 %v609_v34  ;;  %593 = vmatprep.mubr.msk.f32.mxu0 %vm295_vm11, %v288_v35 }
  0xe4   : > { %vm287_vm13 = vcmp.eq.s32.totalorder %v610_v36, %v923_v3 }
  0xe5   : > { %v289_v37 = vsel %vm287_vm13, 1.0, %v775_v13 }
  0xe6   : > { %594 = vmatmul.mubr.msk.f32.vlgmr.msra.gmra.mxu0 %vm295_vm11, %v289_v37 }
 0x18e   : > { %v606_v38 = vpop.f32.mrf.mxu1 }
 0x190   : > { %v450_v41 = vpop.f32.mrf.mxu1 }
 0x1a6   : > { %v595_v39 = vpop.f32.mrf.mxu0 }
 0x1a7   : > { %v456_v40 = vadd.f32 %v606_v38, %v595_v39 }
 0x1a8   : > { %v368_v42 = vpop.f32.mrf.mxu0 }
 0x1a9   : > { %v464_v43 = vsel %vm245_vm5, %v456_v40, 0.0  ;;  %v451_v44 = vadd.f32 %v450_v41, %v368_v42 }
 0x1aa   : > { %466 = vst [vmem:[%s231_s17 + $0x8] sm:$0xff] %v464_v43 }
 0x1ab   : > { %v463_v45 = vsel %vm244_vm4, %v451_v44, 0.0 }
 0x1ac   : > { %465 = vst [vmem:[%s231_s17] sm:$0xff] %v463_v45 }
 0x1ad   : > { %717 = shalt.err (!%p714_p7)
}
 0x1ae   : > { %s718_s11 = scalar_lea.hbm %s982_s22, 256  ;;  %s722_s16 = scalar_lea.hbm %s1033_s5, 512 }
 0x1af   : > { %p719_p9 = scmp.ne.s32.totalorder %s982_s22, %s718_s11  ;;  %p723_p5 = scmp.lt.s32.totalorder %s982_s22, %s1033_s5 }
 0x1b0   : > { %p724_p11 = scmp.lt.s32.totalorder %s722_s16, %s718_s11 }
 0x1b1   : > { %p720_p0 = pnand %p719_p9, %p1044_p4 }
 0x1b2   : > { %p725_p2 = por %p724_p11, %p723_p5 }
 0x1b3   : > { %p721_p12 = pneg %p720_p0 }
 0x1b5   : > { %p726_p3 = pnand %p725_p2, %p721_p12 }
 0x1b7   : > { %729 = shalt.err (!%p726_p3)
}
 0x1b8   : > { %s777_s17 = smov 128   ;;  %s778_s8 = smov 8  }
 0x1b9   : > { %613 = dma.vmem_to_hbm [thread:$0]  (%p1044_p4), %s974_s18, 256, %s982_s22, %s468_s26, %s777_s17, %s777_s17, %s778_s8  }
 0x1ba PF: > { %s496_s19 = sand.u32 1, %s758_s23   ;;  %p1045_p6 = scmp.ne.s32.totalorder %s1039_s10, 0 }
 0x1bb   : > { %p1046_p8 = scmp.ge.s32.totalorder %s770_s25, 2  ;;  %s497_s21 = scalar_lea.sflag [#allocation6], %s496_s19 }
 0x1bd   : > { %p620_p10 = pnand %p1046_p8, %p1045_p6 }
 0x1bf   : > { %p621_p13 = pneg %p620_p10 }
 0x1c1   : > { %753 = dma.done.wait (%p621_p13), %s497_s21, 256  }
 0x1c2   : > { %755 = vsyncadd (%p621_p13), %s497_s21, 4294967040  ;;  %p24_p1 = scmp.ge.s32.totalorder %s837_s28, 4   ;;  %s1047_s23 = smov %s762_s0 }
 0x1c3   : > { %s1048_s0 = smov %s766_s24  ;;  %s1049_s24 = smov %s849_s6 }
 0x1c4   : > { %s1050_s25 = smov %s837_s28  ;;  %26 = sbr.rel (!%p24_p1) target bundleno = 20 (0x14), region = 84 }
 0x1c9   :  { %502 = vsyncpa [#allocation5], 1 }
 0x1ca   :  { %504 = vsyncpa [#allocation5 + $0x1], 1 }
 0x1cb   :  { %505 = vsyncpa [#allocation6], 1 }
 0x1cc   :  { %507 = vsyncpa [#allocation6 + $0x1], 1 }

</bundles_post_ra>
